<compile_context>
chip_gen: v7x
topology: tpu7x:2x2x1
jax: 0.10.0
libtpu: 0.0.40
codegen_flags: <defaults>
</compile_context>

<pallas_src>
import functools

import numpy as np

import jax
import jax.numpy as jnp
from jax.experimental import pallas as pl
from jax.experimental.pallas import tpu as pltpu


# ---------------------------------------------------------------------------
# Host-side (trace-time) constant builders, passed to the kernel as inputs.
# ---------------------------------------------------------------------------

def _conv_masks(H, W, K):
    """(K*K, H*W) 0/1 validity masks for each conv tap ("same" padding)."""
    r = (K - 1) // 2
    p = np.arange(H * W)
    h, w = p // W, p % W
    masks = np.zeros((K * K, H * W), np.float32)
    for kh in range(K):
        for kw in range(K):
            dh, dw = kh - r, kw - r
            ok = (h + dh >= 0) & (h + dh < H) & (w + dw >= 0) & (w + dw < W)
            masks[kh * K + kw] = ok
    return masks


def _pool_select(H, W, ph, pw):
    """(H*W, Ho*Wo) 0/1 matrix selecting the anchor lane of every pool window."""
    Ho, Wo = H // ph, W // pw
    sel = np.zeros((H * W, Ho * Wo), np.float32)
    q = np.arange(Ho * Wo)
    anchors = (q // Wo) * (ph * W) + (q % Wo) * pw
    sel[anchors, q] = 1.0
    return sel


# ---------------------------------------------------------------------------
# Kernel
# ---------------------------------------------------------------------------

def _stage(x, w_mat, scale, shift, masks, sel, *, W, K, pool):
    """One Downsampling2d stage, entirely in registers.

    x      : (Cin, H*W)       activations, flattened spatial on the lane dim
    w_mat  : (Cout, K*K*Cin)  conv weights, contraction-major
    scale  : (Cout, 1)        folded BatchNorm scale
    shift  : (Cout, 1)        folded conv-bias + BatchNorm shift
    masks  : (K*K, H*W)       0/1 "same"-padding validity per tap
    sel    : (H*W, Ho*Wo)     0/1 pooling-anchor selection matrix
    returns  (Cout, Ho*Wo)
    """
    r = (K - 1) // 2

    # ---- im2col via lane rolls + edge masks (no padded buffer, no slices of
    #      a padded image), stacked on the contraction axis -----------------
    patches = []
    for kh in range(K):
        for kw in range(K):
            off = (kh - r) * W + (kw - r)
            shifted = x if off == 0 else jnp.roll(x, -off, axis=-1)
            t = kh * K + kw
            patches.append(shifted * masks[t:t + 1, :])
    pmat = jnp.concatenate(patches, axis=0)                        # (K*K*Cin, H*W)

    # ---- conv as ONE MXU matmul; lane-dense output (Cout sublanes, H*W lanes)
    y = jnp.dot(w_mat, pmat, preferred_element_type=jnp.float32)   # (Cout, H*W)

    # ---- folded eval-mode BatchNorm affine + ReLU (VPU, f32) --------------
    y = jnp.maximum(y * scale + shift, 0.0)

    # ---- MaxPool: running max over lane-rolled copies, then one selection
    #      matmul gathers each window's anchor -> (Cout, Ho*Wo) -------------
    ph, pw = pool
    m = y
    for dh in range(ph):
        for dw in range(pw):
            if dh == 0 and dw == 0:
                continue
            m = jnp.maximum(m, jnp.roll(y, -(dh * W + dw), axis=-1))
    return jnp.dot(m, sel, preferred_element_type=jnp.float32)     # (Cout, Ho*Wo)


def _encoder_kernel(*refs, stage_cfgs):
    """Fused encoder: all stages for one batch element, no HBM intermediates."""
    x_ref, o_ref = refs[0], refs[-1]
    x = x_ref[0]                                   # (Cin0, H0*W0)
    pos = 1
    for cfg in stage_cfgs:
        w_ref, sc_ref, sh_ref, m_ref, s_ref = refs[pos:pos + 5]
        pos += 5
        x = _stage(x, w_ref[...], sc_ref[...], sh_ref[...],
                   m_ref[...], s_ref[...], **cfg)
    # Flatten (Cout, Ho*Wo) -> (1, Cout*Ho*Wo) by lane-concat of the channel
    # rows: a lane-dense (>=128 lanes) unmasked store, and the flat order is
    # exactly row-major NCHW for this batch element.
    cout = x.shape[0]
    o_ref[0] = jnp.concatenate([x[c:c + 1, :] for c in range(cout)], axis=1)


# ---------------------------------------------------------------------------
# Wrapper
# ---------------------------------------------------------------------------

def encoder_forward(x_nchw, stages):
    """Run the whole encoder as a single fused pallas_call."""
    N, C, H, W = x_nchw.shape

    operands = [x_nchw.reshape(N, C, H * W)]       # free reshape, no pad/transpose
    in_specs = [pl.BlockSpec((1, C, H * W), lambda n: (n, 0, 0))]
    stage_cfgs = []

    c, h, w = C, H, W
    for st in stages:
        K = st["K"]
        ph, pw = st["pool"]
        assert K % 2 == 1, "only odd kernel sizes ('same' padding) supported"
        assert h % ph == 0 and w % pw == 0, \
            "spatial dims must be divisible by the pooling window"
        masks = jnp.asarray(_conv_masks(h, w, K))
        sel = jnp.asarray(_pool_select(h, w, ph, pw))
        for arr in (st["w_mat"], st["scale"], st["shift"], masks, sel):
            operands.append(arr)
            in_specs.append(pl.BlockSpec(arr.shape, lambda n: (0, 0)))
        stage_cfgs.append(dict(W=w, K=K, pool=(ph, pw)))
        c, h, w = st["cout"], h // ph, w // pw

    flat_out = c * h * w
    kernel = functools.partial(_encoder_kernel, stage_cfgs=tuple(stage_cfgs))

    # TODO(synk): at realistic H/W/C, tile H into row-bands with a halo (extra
    # grid axis, "parallel") and cast MXU operands to bf16; unnecessary here
    # (total per-step residency is ~100 KB, far below any VMEM limit).
    out = pl.pallas_call(
        kernel,
        out_shape=jax.ShapeDtypeStruct((N, 1, flat_out), jnp.float32),
        grid_spec=pltpu.PrefetchScalarGridSpec(
            num_scalar_prefetch=0,
            grid=(N,),
            in_specs=in_specs,
            out_specs=pl.BlockSpec((1, 1, flat_out), lambda n: (n, 0, 0)),
        ),
        compiler_params=pltpu.CompilerParams(
            dimension_semantics=("parallel",)),
    )(*operands)

    return out.reshape(N, c, h, w)                 # free reshape back to NCHW


class EncoderPallas:
    """Succession of Downsampling2d stages (conv+BN+ReLU -> maxpool)."""

    K = 3

    def __init__(self, in_channels, dense_layers, pooling_windows, key):
        assert len(dense_layers) == len(pooling_windows)
        self.stages = []
        c = in_channels
        K = self.K
        eps = 1e-5
        for layer_kwargs, pool in zip(dense_layers, pooling_windows):
            cout = layer_kwargs["channels"]
            key, k_w, k_b = jax.random.split(key, 3)
            # deterministic synthetic init (PyTorch Conv2d-style uniform bound)
            bound = 1.0 / float(c * K * K) ** 0.5
            w = jax.random.uniform(k_w, (K, K, c, cout), jnp.float32,
                                   -bound, bound)              # HWIO
            b = jax.random.uniform(k_b, (cout,), jnp.float32, -bound, bound)
            gamma = jnp.ones((cout,), jnp.float32)
            beta = jnp.zeros((cout,), jnp.float32)
            # TODO(synk): BatchNorm folded in eval mode (running_mean=0,
            # running_var=1); training-mode batch statistics are not modeled.
            scale = gamma / jnp.sqrt(1.0 + eps)
            shift = beta + scale * b
            if np.isscalar(pool):
                pool_hw = (int(pool), int(pool))
            else:
                pool_hw = tuple(int(p) for p in pool)
            self.stages.append(dict(
                w=w,                                          # HWIO (reference)
                w_mat=jnp.asarray(w.reshape(K * K * c, cout).T),  # (Cout, K*K*Cin)
                scale=scale.reshape(cout, 1),
                shift=shift.reshape(cout, 1),
                cout=int(cout),
                K=K,
                pool=pool_hw,
            ))
            c = cout
        # dropout=None in this configuration -> no dropout layer.

    def __call__(self, x_nchw):
        return encoder_forward(x_nchw, self.stages)


def reference_forward(x_nchw, stages):
    """Pure-JAX reference (conv + affine + relu + maxpool) for validation."""
    x = jnp.transpose(x_nchw, (0, 2, 3, 1))
    for st in stages:
        y = jax.lax.conv_general_dilated(
            x, st["w"], window_strides=(1, 1), padding="SAME",
            dimension_numbers=("NHWC", "HWIO", "NHWC"))
        y = y * st["scale"][:, 0] + st["shift"][:, 0]
        y = jnp.maximum(y, 0.0)
        ph, pw = st["pool"]
        y = jax.lax.reduce_window(y, -jnp.inf, jax.lax.max,
                                  (1, ph, pw, 1), (1, ph, pw, 1), "VALID")
        x = y
    return jnp.transpose(x, (0, 3, 1, 2))


if __name__ == "__main__":
    key = jax.random.PRNGKey(0)
    key, kx = jax.random.split(key)

    # Encoder(in_channels=4,
    #         dense_layers=[{"channels": 8}, {"channels": 16}],
    #         pooling_windows=[2, 2], pooling_type="max",
    #         padded=True, activation="relu", dropout=None)
    x = jax.random.normal(kx, (2, 4, 16, 16), jnp.float32)   # NCHW

    enc = EncoderPallas(in_channels=4,
                        dense_layers=[{"channels": 8}, {"channels": 16}],
                        pooling_windows=[2, 2],
                        key=key)

    out = jax.block_until_ready(enc(x))
    assert out.shape == (2, 16, 4, 4), out.shape

    ref = reference_forward(x, enc.stages)
    if not jnp.allclose(out, ref, rtol=5e-2, atol=5e-2):
        max_err = jnp.max(jnp.abs(out - ref))
        raise AssertionError(f"mismatch vs reference, max abs err={max_err}")

    print("KERNEL_OK")
</pallas_src>

<mosaic_0001>
module attributes {stable_mosaic.version = 11 : i64} {
  func.func @_encoder_kernel(%arg0: i32, %arg1: memref<1x4x256xf32, #tpu.memory_space<vmem>>, %arg2: memref<8x36xf32, #tpu.memory_space<vmem>>, %arg3: memref<8x1xf32, #tpu.memory_space<vmem>>, %arg4: memref<8x1xf32, #tpu.memory_space<vmem>>, %arg5: memref<9x256xf32, #tpu.memory_space<vmem>>, %arg6: memref<256x64xf32, #tpu.memory_space<vmem>>, %arg7: memref<16x72xf32, #tpu.memory_space<vmem>>, %arg8: memref<16x1xf32, #tpu.memory_space<vmem>>, %arg9: memref<16x1xf32, #tpu.memory_space<vmem>>, %arg10: memref<9x64xf32, #tpu.memory_space<vmem>>, %arg11: memref<64x16xf32, #tpu.memory_space<vmem>>, %arg12: memref<1x1x256xf32, #tpu.memory_space<vmem>>) attributes {dimension_semantics = [#tpu.dimension_semantics<parallel>], iteration_bounds = array<i64: 2>, scalar_prefetch = 0 : i64, scratch_operands = 0 : i64, tpu.core_type = #tpu.core_type<tc>, window_params = [{transform_indices = @transform_0, window_bounds = array<i64: 1, 4, 256>}, {pipeline_mode = #tpu.pipeline_mode<synchronous>, transform_indices = @transform_1, window_bounds = array<i64: 8, 36>}, {pipeline_mode = #tpu.pipeline_mode<synchronous>, transform_indices = @transform_2, window_bounds = array<i64: 8, 1>}, {pipeline_mode = #tpu.pipeline_mode<synchronous>, transform_indices = @transform_3, window_bounds = array<i64: 8, 1>}, {pipeline_mode = #tpu.pipeline_mode<synchronous>, transform_indices = @transform_4, window_bounds = array<i64: 9, 256>}, {pipeline_mode = #tpu.pipeline_mode<synchronous>, transform_indices = @transform_5, window_bounds = array<i64: 256, 64>}, {pipeline_mode = #tpu.pipeline_mode<synchronous>, transform_indices = @transform_6, window_bounds = array<i64: 16, 72>}, {pipeline_mode = #tpu.pipeline_mode<synchronous>, transform_indices = @transform_7, window_bounds = array<i64: 16, 1>}, {pipeline_mode = #tpu.pipeline_mode<synchronous>, transform_indices = @transform_8, window_bounds = array<i64: 16, 1>}, {pipeline_mode = #tpu.pipeline_mode<synchronous>, transform_indices = @transform_9, window_bounds = array<i64: 9, 64>}, {pipeline_mode = #tpu.pipeline_mode<synchronous>, transform_indices = @transform_10, window_bounds = array<i64: 64, 16>}, {transform_indices = @transform_11, window_bounds = array<i64: 1, 1, 256>}]} {
    %c0 = arith.constant 0 : index
    %c0_0 = arith.constant 0 : index
    %c0_1 = arith.constant 0 : index
    %0 = vector.load %arg1[%c0, %c0_0, %c0_1] : memref<1x4x256xf32, #tpu.memory_space<vmem>>, vector<1x4x256xf32>
    %1 = vector.shape_cast %0 : vector<1x4x256xf32> to vector<4x256xf32>
    %c0_2 = arith.constant 0 : index
    %c0_3 = arith.constant 0 : index
    %2 = vector.load %arg2[%c0_2, %c0_3] : memref<8x36xf32, #tpu.memory_space<vmem>>, vector<8x36xf32>
    %c0_4 = arith.constant 0 : index
    %c0_5 = arith.constant 0 : index
    %3 = vector.load %arg3[%c0_4, %c0_5] : memref<8x1xf32, #tpu.memory_space<vmem>>, vector<8x1xf32>
    %c0_6 = arith.constant 0 : index
    %c0_7 = arith.constant 0 : index
    %4 = vector.load %arg4[%c0_6, %c0_7] : memref<8x1xf32, #tpu.memory_space<vmem>>, vector<8x1xf32>
    %c0_8 = arith.constant 0 : index
    %c0_9 = arith.constant 0 : index
    %5 = vector.load %arg5[%c0_8, %c0_9] : memref<9x256xf32, #tpu.memory_space<vmem>>, vector<9x256xf32>
    %c0_10 = arith.constant 0 : index
    %c0_11 = arith.constant 0 : index
    %6 = vector.load %arg6[%c0_10, %c0_11] : memref<256x64xf32, #tpu.memory_space<vmem>>, vector<256x64xf32>
    %7 = vector.extract_strided_slice %1 {offsets = [0, 239], sizes = [4, 17], strides = [1, 1]} : vector<4x256xf32> to vector<4x17xf32>
    %8 = vector.extract_strided_slice %1 {offsets = [0, 0], sizes = [4, 239], strides = [1, 1]} : vector<4x256xf32> to vector<4x239xf32>
    %9 = tpu.concatenate %7, %8 in 1 : vector<4x17xf32>, vector<4x239xf32> -> vector<4x256xf32>
    %10 = vector.extract_strided_slice %5 {offsets = [0, 0], sizes = [1, 256], strides = [1, 1]} : vector<9x256xf32> to vector<1x256xf32>
    %11 = vector.broadcast %10 : vector<1x256xf32> to vector<4x256xf32>
    %12 = arith.mulf %9, %11 : vector<4x256xf32>
    %13 = vector.extract_strided_slice %1 {offsets = [0, 240], sizes = [4, 16], strides = [1, 1]} : vector<4x256xf32> to vector<4x16xf32>
    %14 = vector.extract_strided_slice %1 {offsets = [0, 0], sizes = [4, 240], strides = [1, 1]} : vector<4x256xf32> to vector<4x240xf32>
    %15 = tpu.concatenate %13, %14 in 1 : vector<4x16xf32>, vector<4x240xf32> -> vector<4x256xf32>
    %16 = vector.extract_strided_slice %5 {offsets = [1, 0], sizes = [1, 256], strides = [1, 1]} : vector<9x256xf32> to vector<1x256xf32>
    %17 = vector.broadcast %16 : vector<1x256xf32> to vector<4x256xf32>
    %18 = arith.mulf %15, %17 : vector<4x256xf32>
    %19 = vector.extract_strided_slice %1 {offsets = [0, 241], sizes = [4, 15], strides = [1, 1]} : vector<4x256xf32> to vector<4x15xf32>
    %20 = vector.extract_strided_slice %1 {offsets = [0, 0], sizes = [4, 241], strides = [1, 1]} : vector<4x256xf32> to vector<4x241xf32>
    %21 = tpu.concatenate %19, %20 in 1 : vector<4x15xf32>, vector<4x241xf32> -> vector<4x256xf32>
    %22 = vector.extract_strided_slice %5 {offsets = [2, 0], sizes = [1, 256], strides = [1, 1]} : vector<9x256xf32> to vector<1x256xf32>
    %23 = vector.broadcast %22 : vector<1x256xf32> to vector<4x256xf32>
    %24 = arith.mulf %21, %23 : vector<4x256xf32>
    %25 = vector.extract_strided_slice %1 {offsets = [0, 255], sizes = [4, 1], strides = [1, 1]} : vector<4x256xf32> to vector<4x1xf32>
    %26 = vector.extract_strided_slice %1 {offsets = [0, 0], sizes = [4, 255], strides = [1, 1]} : vector<4x256xf32> to vector<4x255xf32>
    %27 = tpu.concatenate %25, %26 in 1 : vector<4x1xf32>, vector<4x255xf32> -> vector<4x256xf32>
    %28 = vector.extract_strided_slice %5 {offsets = [3, 0], sizes = [1, 256], strides = [1, 1]} : vector<9x256xf32> to vector<1x256xf32>
    %29 = vector.broadcast %28 : vector<1x256xf32> to vector<4x256xf32>
    %30 = arith.mulf %27, %29 : vector<4x256xf32>
    %31 = vector.extract_strided_slice %5 {offsets = [4, 0], sizes = [1, 256], strides = [1, 1]} : vector<9x256xf32> to vector<1x256xf32>
    %32 = vector.broadcast %31 : vector<1x256xf32> to vector<4x256xf32>
    %33 = arith.mulf %1, %32 : vector<4x256xf32>
    %34 = vector.extract_strided_slice %1 {offsets = [0, 1], sizes = [4, 255], strides = [1, 1]} : vector<4x256xf32> to vector<4x255xf32>
    %35 = vector.extract_strided_slice %1 {offsets = [0, 0], sizes = [4, 1], strides = [1, 1]} : vector<4x256xf32> to vector<4x1xf32>
    %36 = tpu.concatenate %34, %35 in 1 : vector<4x255xf32>, vector<4x1xf32> -> vector<4x256xf32>
    %37 = vector.extract_strided_slice %5 {offsets = [5, 0], sizes = [1, 256], strides = [1, 1]} : vector<9x256xf32> to vector<1x256xf32>
    %38 = vector.broadcast %37 : vector<1x256xf32> to vector<4x256xf32>
    %39 = arith.mulf %36, %38 : vector<4x256xf32>
    %40 = vector.extract_strided_slice %1 {offsets = [0, 15], sizes = [4, 241], strides = [1, 1]} : vector<4x256xf32> to vector<4x241xf32>
    %41 = vector.extract_strided_slice %1 {offsets = [0, 0], sizes = [4, 15], strides = [1, 1]} : vector<4x256xf32> to vector<4x15xf32>
    %42 = tpu.concatenate %40, %41 in 1 : vector<4x241xf32>, vector<4x15xf32> -> vector<4x256xf32>
    %43 = vector.extract_strided_slice %5 {offsets = [6, 0], sizes = [1, 256], strides = [1, 1]} : vector<9x256xf32> to vector<1x256xf32>
    %44 = vector.broadcast %43 : vector<1x256xf32> to vector<4x256xf32>
    %45 = arith.mulf %42, %44 : vector<4x256xf32>
    %46 = vector.extract_strided_slice %1 {offsets = [0, 16], sizes = [4, 240], strides = [1, 1]} : vector<4x256xf32> to vector<4x240xf32>
    %47 = vector.extract_strided_slice %1 {offsets = [0, 0], sizes = [4, 16], strides = [1, 1]} : vector<4x256xf32> to vector<4x16xf32>
    %48 = tpu.concatenate %46, %47 in 1 : vector<4x240xf32>, vector<4x16xf32> -> vector<4x256xf32>
    %49 = vector.extract_strided_slice %5 {offsets = [7, 0], sizes = [1, 256], strides = [1, 1]} : vector<9x256xf32> to vector<1x256xf32>
    %50 = vector.broadcast %49 : vector<1x256xf32> to vector<4x256xf32>
    %51 = arith.mulf %48, %50 : vector<4x256xf32>
    %52 = vector.extract_strided_slice %1 {offsets = [0, 17], sizes = [4, 239], strides = [1, 1]} : vector<4x256xf32> to vector<4x239xf32>
    %53 = vector.extract_strided_slice %1 {offsets = [0, 0], sizes = [4, 17], strides = [1, 1]} : vector<4x256xf32> to vector<4x17xf32>
    %54 = tpu.concatenate %52, %53 in 1 : vector<4x239xf32>, vector<4x17xf32> -> vector<4x256xf32>
    %55 = vector.extract_strided_slice %5 {offsets = [8, 0], sizes = [1, 256], strides = [1, 1]} : vector<9x256xf32> to vector<1x256xf32>
    %56 = vector.broadcast %55 : vector<1x256xf32> to vector<4x256xf32>
    %57 = arith.mulf %54, %56 : vector<4x256xf32>
    %58 = tpu.concatenate %12, %18, %24, %30, %33, %39, %45, %51, %57 in 0 : vector<4x256xf32>, vector<4x256xf32>, vector<4x256xf32>, vector<4x256xf32>, vector<4x256xf32>, vector<4x256xf32>, vector<4x256xf32>, vector<4x256xf32>, vector<4x256xf32> -> vector<36x256xf32>
    %cst = arith.constant dense<0.000000e+00> : vector<8x256xf32>
    %59 = tpu.matmul %2, %58, %cst {dimension_numbers = #tpu.dot_dimension_numbers<[1], [0], [0], [1], [0, 0, 1, 1], [], []>} : vector<8x36xf32>, vector<36x256xf32>, vector<8x256xf32> -> vector<8x256xf32>
    %60 = vector.broadcast %3 : vector<8x1xf32> to vector<8x256xf32>
    %61 = arith.mulf %59, %60 : vector<8x256xf32>
    %62 = vector.broadcast %4 : vector<8x1xf32> to vector<8x256xf32>
    %63 = arith.addf %61, %62 : vector<8x256xf32>
    %cst_12 = arith.constant 0.000000e+00 : f32
    %64 = vector.broadcast %cst_12 : f32 to vector<8x256xf32>
    %65 = arith.maximumf %63, %64 : vector<8x256xf32>
    %66 = vector.extract_strided_slice %65 {offsets = [0, 1], sizes = [8, 255], strides = [1, 1]} : vector<8x256xf32> to vector<8x255xf32>
    %67 = vector.extract_strided_slice %65 {offsets = [0, 0], sizes = [8, 1], strides = [1, 1]} : vector<8x256xf32> to vector<8x1xf32>
    %68 = tpu.concatenate %66, %67 in 1 : vector<8x255xf32>, vector<8x1xf32> -> vector<8x256xf32>
    %69 = arith.maximumf %65, %68 : vector<8x256xf32>
    %70 = vector.extract_strided_slice %65 {offsets = [0, 16], sizes = [8, 240], strides = [1, 1]} : vector<8x256xf32> to vector<8x240xf32>
    %71 = vector.extract_strided_slice %65 {offsets = [0, 0], sizes = [8, 16], strides = [1, 1]} : vector<8x256xf32> to vector<8x16xf32>
    %72 = tpu.concatenate %70, %71 in 1 : vector<8x240xf32>, vector<8x16xf32> -> vector<8x256xf32>
    %73 = arith.maximumf %69, %72 : vector<8x256xf32>
    %74 = vector.extract_strided_slice %65 {offsets = [0, 17], sizes = [8, 239], strides = [1, 1]} : vector<8x256xf32> to vector<8x239xf32>
    %75 = vector.extract_strided_slice %65 {offsets = [0, 0], sizes = [8, 17], strides = [1, 1]} : vector<8x256xf32> to vector<8x17xf32>
    %76 = tpu.concatenate %74, %75 in 1 : vector<8x239xf32>, vector<8x17xf32> -> vector<8x256xf32>
    %77 = arith.maximumf %73, %76 : vector<8x256xf32>
    %cst_13 = arith.constant dense<0.000000e+00> : vector<8x64xf32>
    %78 = tpu.matmul %77, %6, %cst_13 {dimension_numbers = #tpu.dot_dimension_numbers<[1], [0], [0], [1], [0, 0, 1, 1], [], []>} : vector<8x256xf32>, vector<256x64xf32>, vector<8x64xf32> -> vector<8x64xf32>
    %c0_14 = arith.constant 0 : index
    %c0_15 = arith.constant 0 : index
    %79 = vector.load %arg7[%c0_14, %c0_15] : memref<16x72xf32, #tpu.memory_space<vmem>>, vector<16x72xf32>
    %c0_16 = arith.constant 0 : index
    %c0_17 = arith.constant 0 : index
    %80 = vector.load %arg8[%c0_16, %c0_17] : memref<16x1xf32, #tpu.memory_space<vmem>>, vector<16x1xf32>
    %c0_18 = arith.constant 0 : index
    %c0_19 = arith.constant 0 : index
    %81 = vector.load %arg9[%c0_18, %c0_19] : memref<16x1xf32, #tpu.memory_space<vmem>>, vector<16x1xf32>
    %c0_20 = arith.constant 0 : index
    %c0_21 = arith.constant 0 : index
    %82 = vector.load %arg10[%c0_20, %c0_21] : memref<9x64xf32, #tpu.memory_space<vmem>>, vector<9x64xf32>
    %c0_22 = arith.constant 0 : index
    %c0_23 = arith.constant 0 : index
    %83 = vector.load %arg11[%c0_22, %c0_23] : memref<64x16xf32, #tpu.memory_space<vmem>>, vector<64x16xf32>
    %84 = vector.extract_strided_slice %78 {offsets = [0, 55], sizes = [8, 9], strides = [1, 1]} : vector<8x64xf32> to vector<8x9xf32>
    %85 = vector.extract_strided_slice %78 {offsets = [0, 0], sizes = [8, 55], strides = [1, 1]} : vector<8x64xf32> to vector<8x55xf32>
    %86 = tpu.concatenate %84, %85 in 1 : vector<8x9xf32>, vector<8x55xf32> -> vector<8x64xf32>
    %87 = vector.extract_strided_slice %82 {offsets = [0, 0], sizes = [1, 64], strides = [1, 1]} : vector<9x64xf32> to vector<1x64xf32>
    %88 = vector.broadcast %87 : vector<1x64xf32> to vector<8x64xf32>
    %89 = arith.mulf %86, %88 : vector<8x64xf32>
    %90 = vector.extract_strided_slice %78 {offsets = [0, 56], sizes = [8, 8], strides = [1, 1]} : vector<8x64xf32> to vector<8x8xf32>
    %91 = vector.extract_strided_slice %78 {offsets = [0, 0], sizes = [8, 56], strides = [1, 1]} : vector<8x64xf32> to vector<8x56xf32>
    %92 = tpu.concatenate %90, %91 in 1 : vector<8x8xf32>, vector<8x56xf32> -> vector<8x64xf32>
    %93 = vector.extract_strided_slice %82 {offsets = [1, 0], sizes = [1, 64], strides = [1, 1]} : vector<9x64xf32> to vector<1x64xf32>
    %94 = vector.broadcast %93 : vector<1x64xf32> to vector<8x64xf32>
    %95 = arith.mulf %92, %94 : vector<8x64xf32>
    %96 = vector.extract_strided_slice %78 {offsets = [0, 57], sizes = [8, 7], strides = [1, 1]} : vector<8x64xf32> to vector<8x7xf32>
    %97 = vector.extract_strided_slice %78 {offsets = [0, 0], sizes = [8, 57], strides = [1, 1]} : vector<8x64xf32> to vector<8x57xf32>
    %98 = tpu.concatenate %96, %97 in 1 : vector<8x7xf32>, vector<8x57xf32> -> vector<8x64xf32>
    %99 = vector.extract_strided_slice %82 {offsets = [2, 0], sizes = [1, 64], strides = [1, 1]} : vector<9x64xf32> to vector<1x64xf32>
    %100 = vector.broadcast %99 : vector<1x64xf32> to vector<8x64xf32>
    %101 = arith.mulf %98, %100 : vector<8x64xf32>
    %102 = vector.extract_strided_slice %78 {offsets = [0, 63], sizes = [8, 1], strides = [1, 1]} : vector<8x64xf32> to vector<8x1xf32>
    %103 = vector.extract_strided_slice %78 {offsets = [0, 0], sizes = [8, 63], strides = [1, 1]} : vector<8x64xf32> to vector<8x63xf32>
    %104 = tpu.concatenate %102, %103 in 1 : vector<8x1xf32>, vector<8x63xf32> -> vector<8x64xf32>
    %105 = vector.extract_strided_slice %82 {offsets = [3, 0], sizes = [1, 64], strides = [1, 1]} : vector<9x64xf32> to vector<1x64xf32>
    %106 = vector.broadcast %105 : vector<1x64xf32> to vector<8x64xf32>
    %107 = arith.mulf %104, %106 : vector<8x64xf32>
    %108 = vector.extract_strided_slice %82 {offsets = [4, 0], sizes = [1, 64], strides = [1, 1]} : vector<9x64xf32> to vector<1x64xf32>
    %109 = vector.broadcast %108 : vector<1x64xf32> to vector<8x64xf32>
    %110 = arith.mulf %78, %109 : vector<8x64xf32>
    %111 = vector.extract_strided_slice %78 {offsets = [0, 1], sizes = [8, 63], strides = [1, 1]} : vector<8x64xf32> to vector<8x63xf32>
    %112 = vector.extract_strided_slice %78 {offsets = [0, 0], sizes = [8, 1], strides = [1, 1]} : vector<8x64xf32> to vector<8x1xf32>
    %113 = tpu.concatenate %111, %112 in 1 : vector<8x63xf32>, vector<8x1xf32> -> vector<8x64xf32>
    %114 = vector.extract_strided_slice %82 {offsets = [5, 0], sizes = [1, 64], strides = [1, 1]} : vector<9x64xf32> to vector<1x64xf32>
    %115 = vector.broadcast %114 : vector<1x64xf32> to vector<8x64xf32>
    %116 = arith.mulf %113, %115 : vector<8x64xf32>
    %117 = vector.extract_strided_slice %78 {offsets = [0, 7], sizes = [8, 57], strides = [1, 1]} : vector<8x64xf32> to vector<8x57xf32>
    %118 = vector.extract_strided_slice %78 {offsets = [0, 0], sizes = [8, 7], strides = [1, 1]} : vector<8x64xf32> to vector<8x7xf32>
    %119 = tpu.concatenate %117, %118 in 1 : vector<8x57xf32>, vector<8x7xf32> -> vector<8x64xf32>
    %120 = vector.extract_strided_slice %82 {offsets = [6, 0], sizes = [1, 64], strides = [1, 1]} : vector<9x64xf32> to vector<1x64xf32>
    %121 = vector.broadcast %120 : vector<1x64xf32> to vector<8x64xf32>
    %122 = arith.mulf %119, %121 : vector<8x64xf32>
    %123 = vector.extract_strided_slice %78 {offsets = [0, 8], sizes = [8, 56], strides = [1, 1]} : vector<8x64xf32> to vector<8x56xf32>
    %124 = vector.extract_strided_slice %78 {offsets = [0, 0], sizes = [8, 8], strides = [1, 1]} : vector<8x64xf32> to vector<8x8xf32>
    %125 = tpu.concatenate %123, %124 in 1 : vector<8x56xf32>, vector<8x8xf32> -> vector<8x64xf32>
    %126 = vector.extract_strided_slice %82 {offsets = [7, 0], sizes = [1, 64], strides = [1, 1]} : vector<9x64xf32> to vector<1x64xf32>
    %127 = vector.broadcast %126 : vector<1x64xf32> to vector<8x64xf32>
    %128 = arith.mulf %125, %127 : vector<8x64xf32>
    %129 = vector.extract_strided_slice %78 {offsets = [0, 9], sizes = [8, 55], strides = [1, 1]} : vector<8x64xf32> to vector<8x55xf32>
    %130 = vector.extract_strided_slice %78 {offsets = [0, 0], sizes = [8, 9], strides = [1, 1]} : vector<8x64xf32> to vector<8x9xf32>
    %131 = tpu.concatenate %129, %130 in 1 : vector<8x55xf32>, vector<8x9xf32> -> vector<8x64xf32>
    %132 = vector.extract_strided_slice %82 {offsets = [8, 0], sizes = [1, 64], strides = [1, 1]} : vector<9x64xf32> to vector<1x64xf32>
    %133 = vector.broadcast %132 : vector<1x64xf32> to vector<8x64xf32>
    %134 = arith.mulf %131, %133 : vector<8x64xf32>
    %135 = tpu.concatenate %89, %95, %101, %107, %110, %116, %122, %128, %134 in 0 : vector<8x64xf32>, vector<8x64xf32>, vector<8x64xf32>, vector<8x64xf32>, vector<8x64xf32>, vector<8x64xf32>, vector<8x64xf32>, vector<8x64xf32>, vector<8x64xf32> -> vector<72x64xf32>
    %cst_24 = arith.constant dense<0.000000e+00> : vector<16x64xf32>
    %136 = tpu.matmul %79, %135, %cst_24 {dimension_numbers = #tpu.dot_dimension_numbers<[1], [0], [0], [1], [0, 0, 1, 1], [], []>} : vector<16x72xf32>, vector<72x64xf32>, vector<16x64xf32> -> vector<16x64xf32>
    %137 = vector.broadcast %80 : vector<16x1xf32> to vector<16x64xf32>
    %138 = arith.mulf %136, %137 : vector<16x64xf32>
    %139 = vector.broadcast %81 : vector<16x1xf32> to vector<16x64xf32>
    %140 = arith.addf %138, %139 : vector<16x64xf32>
    %cst_25 = arith.constant 0.000000e+00 : f32
    %141 = vector.broadcast %cst_25 : f32 to vector<16x64xf32>
    %142 = arith.maximumf %140, %141 : vector<16x64xf32>
    %143 = vector.extract_strided_slice %142 {offsets = [0, 1], sizes = [16, 63], strides = [1, 1]} : vector<16x64xf32> to vector<16x63xf32>
    %144 = vector.extract_strided_slice %142 {offsets = [0, 0], sizes = [16, 1], strides = [1, 1]} : vector<16x64xf32> to vector<16x1xf32>
    %145 = tpu.concatenate %143, %144 in 1 : vector<16x63xf32>, vector<16x1xf32> -> vector<16x64xf32>
    %146 = arith.maximumf %142, %145 : vector<16x64xf32>
    %147 = vector.extract_strided_slice %142 {offsets = [0, 8], sizes = [16, 56], strides = [1, 1]} : vector<16x64xf32> to vector<16x56xf32>
    %148 = vector.extract_strided_slice %142 {offsets = [0, 0], sizes = [16, 8], strides = [1, 1]} : vector<16x64xf32> to vector<16x8xf32>
    %149 = tpu.concatenate %147, %148 in 1 : vector<16x56xf32>, vector<16x8xf32> -> vector<16x64xf32>
    %150 = arith.maximumf %146, %149 : vector<16x64xf32>
    %151 = vector.extract_strided_slice %142 {offsets = [0, 9], sizes = [16, 55], strides = [1, 1]} : vector<16x64xf32> to vector<16x55xf32>
    %152 = vector.extract_strided_slice %142 {offsets = [0, 0], sizes = [16, 9], strides = [1, 1]} : vector<16x64xf32> to vector<16x9xf32>
    %153 = tpu.concatenate %151, %152 in 1 : vector<16x55xf32>, vector<16x9xf32> -> vector<16x64xf32>
    %154 = arith.maximumf %150, %153 : vector<16x64xf32>
    %cst_26 = arith.constant dense<0.000000e+00> : vector<16x16xf32>
    %155 = tpu.matmul %154, %83, %cst_26 {dimension_numbers = #tpu.dot_dimension_numbers<[1], [0], [0], [1], [0, 0, 1, 1], [], []>} : vector<16x64xf32>, vector<64x16xf32>, vector<16x16xf32> -> vector<16x16xf32>
    %156 = vector.extract_strided_slice %155 {offsets = [0, 0], sizes = [1, 16], strides = [1, 1]} : vector<16x16xf32> to vector<1x16xf32>
    %157 = vector.extract_strided_slice %155 {offsets = [1, 0], sizes = [1, 16], strides = [1, 1]} : vector<16x16xf32> to vector<1x16xf32>
    %158 = vector.extract_strided_slice %155 {offsets = [2, 0], sizes = [1, 16], strides = [1, 1]} : vector<16x16xf32> to vector<1x16xf32>
    %159 = vector.extract_strided_slice %155 {offsets = [3, 0], sizes = [1, 16], strides = [1, 1]} : vector<16x16xf32> to vector<1x16xf32>
    %160 = vector.extract_strided_slice %155 {offsets = [4, 0], sizes = [1, 16], strides = [1, 1]} : vector<16x16xf32> to vector<1x16xf32>
    %161 = vector.extract_strided_slice %155 {offsets = [5, 0], sizes = [1, 16], strides = [1, 1]} : vector<16x16xf32> to vector<1x16xf32>
    %162 = vector.extract_strided_slice %155 {offsets = [6, 0], sizes = [1, 16], strides = [1, 1]} : vector<16x16xf32> to vector<1x16xf32>
    %163 = vector.extract_strided_slice %155 {offsets = [7, 0], sizes = [1, 16], strides = [1, 1]} : vector<16x16xf32> to vector<1x16xf32>
    %164 = vector.extract_strided_slice %155 {offsets = [8, 0], sizes = [1, 16], strides = [1, 1]} : vector<16x16xf32> to vector<1x16xf32>
    %165 = vector.extract_strided_slice %155 {offsets = [9, 0], sizes = [1, 16], strides = [1, 1]} : vector<16x16xf32> to vector<1x16xf32>
    %166 = vector.extract_strided_slice %155 {offsets = [10, 0], sizes = [1, 16], strides = [1, 1]} : vector<16x16xf32> to vector<1x16xf32>
    %167 = vector.extract_strided_slice %155 {offsets = [11, 0], sizes = [1, 16], strides = [1, 1]} : vector<16x16xf32> to vector<1x16xf32>
    %168 = vector.extract_strided_slice %155 {offsets = [12, 0], sizes = [1, 16], strides = [1, 1]} : vector<16x16xf32> to vector<1x16xf32>
    %169 = vector.extract_strided_slice %155 {offsets = [13, 0], sizes = [1, 16], strides = [1, 1]} : vector<16x16xf32> to vector<1x16xf32>
    %170 = vector.extract_strided_slice %155 {offsets = [14, 0], sizes = [1, 16], strides = [1, 1]} : vector<16x16xf32> to vector<1x16xf32>
    %171 = vector.extract_strided_slice %155 {offsets = [15, 0], sizes = [1, 16], strides = [1, 1]} : vector<16x16xf32> to vector<1x16xf32>
    %172 = tpu.concatenate %156, %157, %158, %159, %160, %161, %162, %163, %164, %165, %166, %167, %168, %169, %170, %171 in 1 : vector<1x16xf32>, vector<1x16xf32>, vector<1x16xf32>, vector<1x16xf32>, vector<1x16xf32>, vector<1x16xf32>, vector<1x16xf32>, vector<1x16xf32>, vector<1x16xf32>, vector<1x16xf32>, vector<1x16xf32>, vector<1x16xf32>, vector<1x16xf32>, vector<1x16xf32>, vector<1x16xf32>, vector<1x16xf32> -> vector<1x256xf32>
    %c0_27 = arith.constant 0 : index
    %c0_28 = arith.constant 0 : index
    %c0_29 = arith.constant 0 : index
    %173 = vector.load %arg12[%c0_27, %c0_28, %c0_29] : memref<1x1x256xf32, #tpu.memory_space<vmem>>, vector<1x1x256xf32>
    %174 = vector.shape_cast %173 : vector<1x1x256xf32> to vector<1x256xf32>
    %175 = vector.shape_cast %172 : vector<1x256xf32> to vector<1x1x256xf32>
    tpu.vector_store %arg12[%c0_27, %c0_28, %c0_29], %175 {strides = array<i32>} : memref<1x1x256xf32, #tpu.memory_space<vmem>>, vector<1x1x256xf32>,
    return
  }
  func.func @transform_0(%arg0: i32) -> (i32, i32, i32) {
    %c0_i32 = arith.constant 0 : i32
    %c0_i32_0 = arith.constant 0 : i32
    %c0_i32_1 = arith.constant 0 : i32
    return %arg0, %c0_i32, %c0_i32_0 : i32, i32, i32
  }
  func.func @transform_1(%arg0: i32) -> (i32, i32) {
    %c0_i32 = arith.constant 0 : i32
    %c0_i32_0 = arith.constant 0 : i32
    %c0_i32_1 = arith.constant 0 : i32
    return %c0_i32, %c0_i32_0 : i32, i32
  }
  func.func @transform_2(%arg0: i32) -> (i32, i32) {
    %c0_i32 = arith.constant 0 : i32
    %c0_i32_0 = arith.constant 0 : i32
    %c0_i32_1 = arith.constant 0 : i32
    return %c0_i32, %c0_i32_0 : i32, i32
  }
  func.func @transform_3(%arg0: i32) -> (i32, i32) {
    %c0_i32 = arith.constant 0 : i32
    %c0_i32_0 = arith.constant 0 : i32
    %c0_i32_1 = arith.constant 0 : i32
    return %c0_i32, %c0_i32_0 : i32, i32
  }
  func.func @transform_4(%arg0: i32) -> (i32, i32) {
    %c0_i32 = arith.constant 0 : i32
    %c0_i32_0 = arith.constant 0 : i32
    %c0_i32_1 = arith.constant 0 : i32
    return %c0_i32, %c0_i32_0 : i32, i32
  }
  func.func @transform_5(%arg0: i32) -> (i32, i32) {
    %c0_i32 = arith.constant 0 : i32
    %c0_i32_0 = arith.constant 0 : i32
    %c0_i32_1 = arith.constant 0 : i32
    return %c0_i32, %c0_i32_0 : i32, i32
  }
  func.func @transform_6(%arg0: i32) -> (i32, i32) {
    %c0_i32 = arith.constant 0 : i32
    %c0_i32_0 = arith.constant 0 : i32
    %c0_i32_1 = arith.constant 0 : i32
    return %c0_i32, %c0_i32_0 : i32, i32
  }
  func.func @transform_7(%arg0: i32) -> (i32, i32) {
    %c0_i32 = arith.constant 0 : i32
    %c0_i32_0 = arith.constant 0 : i32
    %c0_i32_1 = arith.constant 0 : i32
    return %c0_i32, %c0_i32_0 : i32, i32
  }
  func.func @transform_8(%arg0: i32) -> (i32, i32) {
    %c0_i32 = arith.constant 0 : i32
    %c0_i32_0 = arith.constant 0 : i32
    %c0_i32_1 = arith.constant 0 : i32
    return %c0_i32, %c0_i32_0 : i32, i32
  }
  func.func @transform_9(%arg0: i32) -> (i32, i32) {
    %c0_i32 = arith.constant 0 : i32
    %c0_i32_0 = arith.constant 0 : i32
    %c0_i32_1 = arith.constant 0 : i32
    return %c0_i32, %c0_i32_0 : i32, i32
  }
  func.func @transform_10(%arg0: i32) -> (i32, i32) {
    %c0_i32 = arith.constant 0 : i32
    %c0_i32_0 = arith.constant 0 : i32
    %c0_i32_1 = arith.constant 0 : i32
    return %c0_i32, %c0_i32_0 : i32, i32
  }
  func.func @transform_11(%arg0: i32) -> (i32, i32, i32) {
    %c0_i32 = arith.constant 0 : i32
    %c0_i32_0 = arith.constant 0 : i32
    %c0_i32_1 = arith.constant 0 : i32
    return %arg0, %c0_i32, %c0_i32_0 : i32, i32, i32
  }
}

</mosaic_0001>

<bundles_post_ra>
// kernel: tpu_custom_call.1
= control target key start
LH: loop header
LB: loop body
LE: loop exit
PB: predicated region body
PF: predicated region fallthrough
CT: control target
= control target key end

     0   :  { %s2268_s0 = inlined_call_operand.vmem [shape: f32[2,4,256], index: 0, kind: input, shape index: {}]   ;;  %s2269_s1 = inlined_call_operand.vmem [shape: f32[8,36], index: 1, kind: input, shape index: {}]   ;;  %s2270_s2 = inlined_call_operand.vmem [shape: f32[8,1], index: 2, kind: input, shape index: {}]   ;;  %s2271_s3 = inlined_call_operand.vmem [shape: f32[8,1], index: 3, kind: input, shape index: {}]   ;;  %s2272_s4 = inlined_call_operand.vmem [shape: f32[9,256], index: 4, kind: input, shape index: {}]   ;;  %s2273_s5 = inlined_call_operand.vmem [shape: f32[256,64], index: 5, kind: input, shape index: {}]   ;;  %s2274_s6 = inlined_call_operand.vmem [shape: f32[16,72], index: 6, kind: input, shape index: {}]   ;;  %s2275_s7 = inlined_call_operand.vmem [shape: f32[16,1], index: 7, kind: input, shape index: {}]   ;;  %s2276_s8 = inlined_call_operand.vmem [shape: f32[16,1], index: 8, kind: input, shape index: {}]   ;;  %s2277_s9 = inlined_call_operand.vmem [shape: f32[9,64], index: 9, kind: input, shape index: {}]   ;;  %s2278_s10 = inlined_call_operand.vmem [shape: f32[64,16], index: 10, kind: input, shape index: {}]   ;;  %s2279_s11 = inlined_call_operand.hbm [shape: f32[2,1,256], index: 11, kind: output, shape index: {}]  }
   0x1   :  { %2296 = sst [smem:[#allocation5_spill]] %s2268_s0 }
   0x2   :  { %16 = vsyncpa [#allocation3], 0 }
   0x3   :  { %18 = vsyncpa [#allocation3 + $0x1], 0  ;;  %s1810_s17 = smov 0   ;;  %s1812_s18 = smov 0  }
   0x4   :  { %s1814_s19 = smov 0   ;;  %s1816_s20 = smov 0  }
   0x5 LB: > { %s1831_s21 = sadd.s32 4294967295, %s1717_s20   ;;  %s1376_s22 = sadd.s32 4294967294, %s1717_s20   ;;  %s1717_s20 = sphi %s1816_s20, %s2312_s20   ;;  %s1713_s19 = sphi %s1814_s19, %s2311_s19   ;;  %s1709_s18 = sphi %s1812_s18, %s2310_s18   ;;  %s1705_s17 = sphi %s1810_s17, %s2309_s17  }
   0x6   : > { %s1835_s23 = sadd.s32 1, %s1717_s20   ;;  %s267_s24 = sadd.s32 1, %s1713_s19 }
   0x7   : > { %s264_s25 = ssub.s32 %s1717_s20, %s1835_s23  ;;  %p277_p0 = scmp.ne.s32.totalorder %s1713_s19, %s1709_s18 }
   0x8   : > { %p265_p1 = scmp.eq.s32.totalorder %s264_s25, 0  ;;  %p278_p2 = scmp.eq.s32.totalorder %s1831_s21, 1 }
   0x9   : > { %p283_p3 = scmp.ne.s32.totalorder %s1709_s18, %s1705_s17  ;;  %p284_p4 = scmp.eq.s32.totalorder %s1376_s22, 1 }
   0xa   : > { %s1846_s26 = scalar_select %p265_p1, %s1713_s19, %s267_s24  }
   0xb   : > { %p1848_p5 = por %p278_p2, %p277_p0  ;;  %p1852_p6 = por %p284_p4, %p283_p3 }
   0xc   : > { %p1379_p7 = scmp.ge.s32.totalorder %s1717_s20, 1  ;;  %p340_p8 = scmp.lt.s32.totalorder %s1717_s20, 3 }
   0xe   : > { %p341_p9 = pnand %p1379_p7, %p340_p8 }
   0xf   : > { %p380_p10 = scmp.lt.s32.totalorder (!%p341_p9), %s1831_s21, 1  ;;  %s2299_s0 = sld [smem:[#allocation5_spill]] (!%p341_p9)  ;;  %v1725_v2 = vmov (!%p341_p9), 0.0   ;;  %v1727_v3 = vmov (!%p341_p9), 0   ;;  %v387_v4 = vld [vmem:[%s2270_s2] sm:$0xff] (!%p341_p9)  ;;  %v437_v6 = vlaneseq (!%p341_p9)  ;;  %v1905_v12 = vld [vmem:[%s2272_s4 + $0x8] sm:$0xff] (!%p341_p9) }
  0x10   : > { %344 = sbr.rel (%p341_p9) target bundleno = 1621 (0x655), region = 64  ;;  %s2282_s15 = smov (!%p341_p9), 1   ;;  %710 = vmatprep.mubr.f32.mxu1 (!%p341_p9), %v1725_v2  ;;  %1637 = vset.pattern.permute.xlu0 (!%p341_p9), %v1727_v3  ;;  %v388_v5 = vld [vmem:[%s2271_s3] sm:$0xff] (!%p341_p9)  ;;  %vm452_vm0 = vcmask (!%p341_p9), 130048   ;;  %vm492_vm1 = vcmask (!%p341_p9), 7168   ;;  %vm432_vm2 = vcmask (!%p341_p9), 138240  }
  0x11   : > { %s2280_s16 = smov (!%p341_p9), 16   ;;  %s1721_s22 = smov (!%p341_p9), 17   ;;  %1638 = vset.pattern.permute.xlu1 (!%p341_p9), %v1727_v3  ;;  %v1892_v7 = vshrl.u32 (!%p341_p9), %v437_v6, 7  ;;  %v1900_v11 = vld [vmem:[%s2272_s4] sm:$0xff] (!%p341_p9)  ;;  %vm472_vm3 = vcmask (!%p341_p9), 121856   ;;  %vm627_vm4 = vcmask (!%p341_p9), 1043456  }
  0x12   : > { %s1722_s24 = smov (!%p341_p9), 15   ;;  %s2284_s25 = smov (!%p341_p9), 127   ;;  %vm524_vm5 = vcmask (!%p341_p9), 1039360   ;;  %vm564_vm6 = vcmask (!%p341_p9), 916480   ;;  %vm544_vm7 = vcmask (!%p341_p9), 924672   ;;  %vm584_vm8 = vcmask (!%p341_p9), 908288  }
  0x13   : > { %s2283_s12 = smov (!%p341_p9), 111   ;;  %v1895_v10 = vsub.s32 (!%p341_p9), 1, %v1892_v7  ;;  %v1908_v13 = vsub.s32 (!%p341_p9), 3, %v1892_v7  ;;  %v1915_v18 = vsub.s32 (!%p341_p9), 0, %v1892_v7  ;;  %v1924_v23 = vsub.s32 (!%p341_p9), 2, %v1892_v7  ;;  %s1735_s13 = smov (!%p341_p9), 65  }
  0x14   : > { %v1927_v24 = vsub.s32 (!%p341_p9), 4, %v1892_v7  ;;  %v1940_v39 = vsub.s32 (!%p341_p9), 5, %v1892_v7  ;;  %v1947_v46 = vsub.s32 (!%p341_p9), 7, %v1892_v7  ;;  %vm636_vm9 = vcmask (!%p341_p9), 293888  }
  0x15   : > { %v460_v15 = vrot.slane (!%p341_p9), %v1900_v11, %v1895_v10  ;;  %v464_v16 = vrot.slane (!%p341_p9), %v1905_v12, %v1895_v10  ;;  %v500_v21 = vrot.slane (!%p341_p9), %v1900_v11, %v1908_v13  ;;  %v504_v22 = vrot.slane (!%p341_p9), %v1905_v12, %v1908_v13 }
  0x16   : > { %v440_v28 = vrot.slane (!%p341_p9), %v1900_v11, %v1915_v18  ;;  %v444_v29 = vrot.slane (!%p341_p9), %v1905_v12, %v1915_v18  ;;  %v480_v37 = vrot.slane (!%p341_p9), %v1900_v11, %v1924_v23  ;;  %v484_v38 = vrot.slane (!%p341_p9), %v1905_v12, %v1924_v23 }
  0x17   : > { %s381_s29 = scalar_select %p380_p10, %s1831_s21, 1  ;;  %v510_v40 = vrot.slane %v1900_v11, %v1927_v24  ;;  %v514_v41 = vrot.slane %v1905_v12, %v1927_v24  ;;  %v533_v55 = vrot.slane %v1900_v11, %v1940_v39  ;;  %v537_v56 = vrot.slane %v1905_v12, %v1940_v39 }
  0x18   : > { %vm963_vm10 = vcmask 588800   ;;  %vm861_vm11 = vcmask 72704   ;;  %vm874_vm12 = vcmask 64512   ;;  %vm887_vm13 = vcmask 56320  }
  0x19   : > { %s1398_s30 = sshll.u32 %s381_s29, 3  ;;  %s2286_s29 = smov 112   ;;  %v517_v57 = vcombine.low %v510_v40, %v514_v41  ;;  %vm917_vm14 = vcmask 515072   ;;  %vm930_vm15 = vcmask 465920  }
  0x1a   : > { %s384_s14 = scalar_lea.vmem %s2299_s0, %s1398_s30  ;;  %s1726_s30 = smov 113  }
  0x1b   : > { %v1863_v0 = vld [vmem:[%s384_s14] sm:$0xff]  ;;  %s2300_s0 = smov 112   ;;  %s2301_s14 = smov 127  }
  0x1c   : > { %490 = vrot.lane.b32.xlu1 %v1863_v0, %s2282_s15  ;;  %450 = vrot.lane.b32.xlu0 %v1863_v0, %s2280_s16  ;;  %v426_v1 = vcombine.high %v1863_v0, %v1863_v0 }
  0x20   : > { %430 = vrot.lane.b32.xlu1 %v1863_v0, %s1721_s22  ;;  %447 = vrot.lane.b32.xlu0 %v426_v1, %s2280_s16  ;;  %s2302_s16 = smov 111  }
  0x24   : > { %487 = vrot.lane.b32.xlu1 %v426_v1, %s2282_s15  ;;  %427 = vrot.lane.b32.xlu0 %v426_v1, %s1721_s22  ;;  %s1729_s22 = smov 9   ;;  %s1731_s15 = smov 8  }
  0x28   : > { %470 = vrot.lane.b32.xlu1 %v1863_v0, %s1722_s24  ;;  %467 = vrot.lane.b32.xlu0 %v426_v1, %s1722_s24  ;;  %s1730_s24 = smov 73  }
  0x2c   : > { %522 = vrot.lane.b32.xlu1 %v426_v1, %s2284_s25  ;;  %520 = vrot.lane.b32.xlu0 %v1863_v0, %s2284_s25  ;;  %s1733_s25 = smov 7  }
  0x30   : > { %562 = vrot.lane.b32.xlu1 %v426_v1, %s2286_s29  ;;  %560 = vrot.lane.b32.xlu0 %v1863_v0, %s2286_s29  ;;  %s2303_s29 = smov 1  }
  0x34   : > { %542 = vrot.lane.b32.xlu1 %v426_v1, %s1726_s30  ;;  %540 = vrot.lane.b32.xlu0 %v1863_v0, %s1726_s30  ;;  %s1734_s30 = smov 71  }
  0x38   : > { %582 = vrot.lane.b32.xlu1 %v426_v1, %s2283_s12  ;;  %580 = vrot.lane.b32.xlu0 %v1863_v0, %s2283_s12  ;;  %s1732_s12 = smov 72  }
  0x3c   : > { %719 = vperm.xlu0 %1637, %v387_v4   ;;  %726 = vperm.xlu1 %1638, %v388_v5   ;;  %v573_v5 = vrot.slane %v1900_v11, %v1947_v46 }
  0x8e   : > { %v491_v8 = vpop.permute.xlu1 %490  ;;  %v451_v9 = vpop.permute.xlu0 %450 }
  0x92   : > { %v431_v14 = vpop.permute.xlu1 %430  ;;  %v448_v17 = vpop.permute.xlu0 %447 }
  0x93   : > { %v453_v19 = vsel %vm452_vm0, %v451_v9, %v448_v17  ;;  %v456_v20 = vsel %vm452_vm0, %v448_v17, %v451_v9  ;;  %v1966_v9 = vsub.s32 6, %v1892_v7 }
  0x94   : > { %v465_v25 = vmul.f32 %v460_v15, %v456_v20  ;;  %v466_v26 = vmul.f32 %v464_v16, %v453_v19  ;;  %v519_v19 = vmul.f32 %v517_v57, %v1863_v0  ;;  %v394_v57 = vld [vmem:[%s2273_s5 + $0x8] sm:$0xff] }
  0x96   : > { %v488_v27 = vpop.permute.xlu1 %487  ;;  %v428_v30 = vpop.permute.xlu0 %427  ;;  %v602_v47 = vrot.slane %v465_v25, 4  ;;  %v603_v48 = vrot.slane %v466_v26, 4  ;;  %v553_v26 = vrot.slane %v1900_v11, %v1966_v9 }
  0x97   : > { %v493_v31 = vsel %vm492_vm1, %v491_v8, %v488_v27  ;;  %v496_v32 = vsel %vm492_vm1, %v488_v27, %v491_v8  ;;  %v433_v33 = vsel %vm432_vm2, %v431_v14, %v428_v30  ;;  %v436_v34 = vsel %vm432_vm2, %v428_v30, %v431_v14 }
  0x98   : > { %v505_v35 = vmul.f32 %v500_v21, %v496_v32  ;;  %v506_v36 = vmul.f32 %v504_v22, %v493_v31  ;;  %v445_v42 = vmul.f32 %v440_v28, %v436_v34  ;;  %v446_v43 = vmul.f32 %v444_v29, %v433_v33 }
  0x99   : > { %v577_v8 = vrot.slane %v1905_v12, %v1947_v46  ;;  %v557_v27 = vrot.slane %v1905_v12, %v1966_v9  ;;  %v613_v32 = vcombine.high %v519_v19, %v519_v19  ;;  %vm956_vm2 = vcmask 449536  }
  0x9a   : > { %v471_v44 = vpop.permute.xlu1 %470  ;;  %v468_v45 = vpop.permute.xlu0 %467  ;;  %v608_v51 = vrot.slane %v505_v35, 4  ;;  %v609_v52 = vrot.slane %v506_v36, 4  ;;  %v629_v60 = vsel %vm627_vm4, %v446_v43, %v603_v48  ;;  %v628_v62 = vsel %vm627_vm4, %v445_v42, %v602_v47 }
  0x9b   : > { %v473_v49 = vsel %vm472_vm3, %v471_v44, %v468_v45  ;;  %v476_v50 = vsel %vm472_vm3, %v468_v45, %v471_v44  ;;  %v1383_v45 = vld [vmem:[%s2272_s4 + $0x10] ss:$0 sm:$0xff]  ;;  %vm1121_vm3 = vcmask 523264  }
  0x9c   : > { %v485_v53 = vmul.f32 %v480_v37, %v476_v50  ;;  %v486_v54 = vmul.f32 %v484_v38, %v473_v49  ;;  %v1384_v38 = vld [vmem:[%s2272_s4 + $0x18] ss:$0 sm:$0xff] }
  0x9e   : > { %v523_v58 = vpop.permute.xlu1 %522  ;;  %v521_v59 = vpop.permute.xlu0 %520  ;;  %v631_v61 = vsel %vm627_vm4, %v486_v54, %v609_v52  ;;  %v630_v63 = vsel %vm627_vm4, %v485_v53, %v608_v51  ;;  %v386_v52 = vld [vmem:[%s2269_s1] sm:$0xff]  ;;  %v410_v54 = vld [vmem:[%s2273_s5 + $0x88] sm:$0xff] }
  0x9f   : > { %v525_v1 = vsel %vm524_vm5, %v521_v59, %v523_v58  ;;  %v529_v2 = vsel %vm524_vm5, %v523_v58, %v521_v59  ;;  %v1496_v3 = vpack.c.bf16 %v631_v61, %v629_v60  ;;  %v1498_v4 = vpack.c.bf16 %v630_v63, %v628_v62  ;;  %v409_v53 = vld [vmem:[%s2273_s5 + $0x80] sm:$0xff]  ;;  %v411_v58 = vld [vmem:[%s2273_s5 + $0x90] sm:$0xff]  ;;  %v412_v59 = vld [vmem:[%s2273_s5 + $0x98] sm:$0xff] }
  0xa0   : > { %v538_v14 = vmul.f32 %v533_v55, %v525_v1  ;;  %v539_v15 = vmul.f32 %v537_v56, %v529_v2  ;;  %v393_v55 = vld [vmem:[%s2273_s5] sm:$0xff]  ;;  %v1504_v56 = vpack.c.bf16 %v410_v54, %v409_v53  ;;  %v1508_v61 = vpack.c.bf16 %v412_v59, %v411_v58  ;;  %v395_v62 = vld [vmem:[%s2273_s5 + $0x10] sm:$0xff]  ;;  %v396_v63 = vld [vmem:[%s2273_s5 + $0x18] sm:$0xff] }
  0xa1   : > { %1497 = vmatprep.subr.bf16.mxu1 %v1496_v3  ;;  %v1506_v60 = vpack.c.bf16 %v394_v57, %v393_v55  ;;  %v413_v1 = vld [vmem:[%s2273_s5 + $0xa0] sm:$0xff]  ;;  %v414_v2 = vld [vmem:[%s2273_s5 + $0xa8] sm:$0xff]  ;;  %v1510_v3 = vpack.c.bf16 %v396_v63, %v395_v62 }
  0xa2   : > { %v563_v16 = vpop.permute.xlu1 %562  ;;  %1499 = vmatpush1.bf16.msra.mxu1 %v1498_v4  ;;  %v561_v17 = vpop.permute.xlu0 %560  ;;  %v617_v28 = vrot.slane %v538_v14, 4  ;;  %v618_v29 = vrot.slane %v539_v15, 4  ;;  %v1512_v4 = vpack.c.bf16 %v414_v2, %v413_v1  ;;  %v415_v14 = vld [vmem:[%s2273_s5 + $0xb0] sm:$0xff]  ;;  %v416_v15 = vld [vmem:[%s2273_s5 + $0xb8] sm:$0xff] }
  0xa3   : > { %v565_v20 = vsel %vm564_vm6, %v561_v17, %v563_v16  ;;  %v569_v21 = vsel %vm564_vm6, %v563_v16, %v561_v17  ;;  %v1516_v17 = vpack.c.bf16 %v416_v15, %v415_v14 }
  0xa4   : > { %v578_v22 = vmul.f32 %v573_v5, %v565_v20  ;;  %v579_v25 = vmul.f32 %v577_v8, %v569_v21  ;;  %v633_v40 = vsel %vm627_vm4, %v613_v32, %v618_v29  ;;  %v632_v42 = vsel %vm627_vm4, %v519_v19, %v617_v28  ;;  %v397_v5 = vld [vmem:[%s2273_s5 + $0x20] sm:$0xff]  ;;  %v398_v8 = vld [vmem:[%s2273_s5 + $0x28] sm:$0xff]  ;;  %v399_v19 = vld [vmem:[%s2273_s5 + $0x30] sm:$0xff] }
  0xa5   : > { %v1514_v16 = vpack.c.bf16 %v398_v8, %v397_v5  ;;  %v400_v20 = vld [vmem:[%s2273_s5 + $0x38] sm:$0xff]  ;;  %v417_v21 = vld [vmem:[%s2273_s5 + $0xc0] sm:$0xff]  ;;  %v402_v28 = vld [vmem:[%s2273_s5 + $0x48] sm:$0xff] }
  0xa6   : > { %v543_v30 = vpop.permute.xlu1 %542  ;;  %v541_v31 = vpop.permute.xlu0 %540  ;;  %v623_v34 = vrot.slane %v578_v22, 4  ;;  %v624_v35 = vrot.slane %v579_v25, 4  ;;  %v418_v22 = vld [vmem:[%s2273_s5 + $0xc8] sm:$0xff]  ;;  %v1518_v25 = vpack.c.bf16 %v400_v20, %v399_v19  ;;  %v419_v29 = vld [vmem:[%s2273_s5 + $0xd0] sm:$0xff] }
  0xa7   : > { %v545_v33 = vsel %vm544_vm7, %v541_v31, %v543_v30  ;;  %v549_v0 = vsel %vm544_vm7, %v543_v30, %v541_v31  ;;  %v420_v30 = vld [vmem:[%s2273_s5 + $0xd8] sm:$0xff]  ;;  %vm1267_vm7 = vcmask 654336  }
  0xa8   : > { %v558_v36 = vmul.f32 %v553_v26, %v545_v33  ;;  %v559_v37 = vmul.f32 %v557_v27, %v549_v0  ;;  %v1520_v26 = vpack.c.bf16 %v418_v22, %v417_v21  ;;  %v401_v27 = vld [vmem:[%s2273_s5 + $0x40] sm:$0xff]  ;;  %v1524_v32 = vpack.c.bf16 %v420_v30, %v419_v29  ;;  %v403_v33 = vld [vmem:[%s2273_s5 + $0x50] sm:$0xff]  ;;  %v404_v0 = vld [vmem:[%s2273_s5 + $0x58] sm:$0xff] }
  0xa9   : > { %v1522_v31 = vpack.c.bf16 %v402_v28, %v401_v27  ;;  %v838_v29 = vld [vmem:[%s2274_s6] sm:$0xff]  ;;  %v841_v30 = vld [vmem:[%s2275_s7 + $0x8] sm:$0xff] }
  0xaa   : > { %v583_v11 = vpop.permute.xlu1 %582  ;;  %v635_v12 = vsel %vm627_vm4, %v559_v37, %v624_v35  ;;  %v581_v41 = vpop.permute.xlu0 %580  ;;  %v634_v43 = vsel %vm627_vm4, %v558_v36, %v623_v34  ;;  %v1526_v34 = vpack.c.bf16 %v404_v0, %v403_v33  ;;  %v421_v35 = vld [vmem:[%s2273_s5 + $0xe0] sm:$0xff]  ;;  %v422_v36 = vld [vmem:[%s2273_s5 + $0xe8] sm:$0xff]  ;;  %1474 = vmatprep.mubr.msk.f32.mxu0 %vm963_vm10, %v838_v29  ;;  %v848_v29 = vld [vmem:[%s2278_s10 + $0x10] sm:$0xff] }
  0xab   : > { %v1500_v44 = vpack.c.bf16 %v635_v12, %v633_v40  ;;  %v585_v47 = vsel %vm584_vm8, %v581_v41, %v583_v11  ;;  %v589_v48 = vsel %vm584_vm8, %v583_v11, %v581_v41  ;;  %v1502_v49 = vpack.c.bf16 %v634_v43, %v632_v42  ;;  %v406_v11 = vld [vmem:[%s2273_s5 + $0x68] sm:$0xff]  ;;  %v423_v43 = vld [vmem:[%s2273_s5 + $0xf0] sm:$0xff]  ;;  %v842_v33 = vld [vmem:[%s2276_s8] sm:$0xff] }
  0xac   : > { %v599_v50 = vmul.f32 %v1384_v38, %v589_v48  ;;  %v598_v51 = vmul.f32 %v1383_v45, %v585_v47  ;;  %v1528_v37 = vpack.c.bf16 %v422_v36, %v421_v35  ;;  %v405_v38 = vld [vmem:[%s2273_s5 + $0x60] sm:$0xff] }
  0xad   : > { %1501 = vmatprep.subr.bf16.mxu1 %v1500_v44  ;;  %v1530_v12 = vpack.c.bf16 %v406_v11, %v405_v38  ;;  %v424_v44 = vld [vmem:[%s2273_s5 + $0xf8] sm:$0xff]  ;;  %v844_v35 = vld [vmem:[%s2277_s9] sm:$0xff] }
  0xae   : > { %1503 = vmatpush1.bf16.msra.mxu1 %v1502_v49  ;;  %v1532_v48 = vpack.c.bf16 %v424_v44, %v423_v43  ;;  %v407_v49 = vld [vmem:[%s2273_s5 + $0x70] sm:$0xff]  ;;  %v866_v36 = vrot.slane %v844_v35, %v1915_v18 }
  0xaf   : > { %1385 = vmatprep.subr.msk.mxu1 %vm627_vm4, %v599_v50  ;;  %v408_v50 = vld [vmem:[%s2273_s5 + $0x78] sm:$0xff] }
  0xb2   : > { %1386 = vmatpush1.msk.msra.mxu1 %vm627_vm4, %v598_v51  ;;  %vm1262_vm4 = vcmask 261120  }
  0xb3   : > { %1387 = vmatmul.mubr.msk.f32.vlgmr.msra.gmra.mrb[0].mxu1 %vm636_vm9, %v386_v52  ;;  %1505 = vmatprep.subr.bf16.mxu1 %v1504_v56  ;;  %v1534_v52 = vpack.c.bf16 %v408_v50, %v407_v49 }
  0xb4   : > { %1507 = vmatpush3.bf16.msra.mxu1 %v1506_v60 }
  0xb5   : > { %1509 = vmatprep.subr.bf16.mxu1 %v1508_v61 }
  0xb8   : > { %1511 = vmatpush3.bf16.msra.mxu1 %v1510_v3 }
  0xb9   : > { %1513 = vmatprep.subr.bf16.mxu1 %v1512_v4 }
  0xbb   : > { %v720_v40 = vpop.permute.xlu0 %719  ;;  %v727_v42 = vpop.permute.xlu1 %726 }
  0xbc   : > { %1515 = vmatpush3.bf16.msra.mxu1 %v1514_v16 }
  0xbd   : > { %1517 = vmatprep.subr.bf16.mxu1 %v1516_v17 }
  0xc0   : > { %1519 = vmatpush3.bf16.msra.mxu1 %v1518_v25 }
  0xc1   : > { %1521 = vmatprep.subr.bf16.mxu1 %v1520_v26 }
  0xc4   : > { %1523 = vmatpush3.bf16.msra.mxu1 %v1522_v31  ;;  %v840_v31 = vld [vmem:[%s2275_s7] sm:$0xff] }
  0xc5   : > { %1525 = vmatprep.subr.bf16.mxu1 %v1524_v32  ;;  %v843_v32 = vld [vmem:[%s2276_s8 + $0x8] sm:$0xff] }
  0xc8   : > { %1527 = vmatpush3.bf16.msra.mxu1 %v1526_v34 }
  0xc9   : > { %1529 = vmatprep.subr.bf16.mxu1 %v1528_v37  ;;  %v879_v37 = vrot.slane %v844_v35, %v1895_v10 }
  0xcc   : > { %1531 = vmatpush3.bf16.msra.mxu1 %v1530_v12 }
  0xcd   : > { %1533 = vmatprep.subr.bf16.mxu1 %v1532_v48  ;;  %v904_v48 = vrot.slane %v844_v35, %v1908_v13 }
  0xd0   : > { %1535 = vmatpush3.bf16.msra.mxu1 %v1534_v52 }
 0x186   : > { %v712_v41 = vpop.f32.mrb[0].mxu1 }
 0x187   : > { %v722_v45 = vmul.f32 %v720_v40, %v712_v41  ;;  %v714_v47 = vpop.f32.mrb[1].mxu1 }
 0x188   : > { %v723_v51 = vmul.f32 %v720_v40, %v714_v47  ;;  %v892_v47 = vrot.slane %v844_v35, %v1924_v23 }
 0x189   : > { %v729_v53 = vadd.f32 %v727_v42, %v722_v45 }
 0x18a   : > { %v730_v54 = vadd.f32 %v727_v42, %v723_v51  ;;  %v909_v51 = vrot.slane %v844_v35, %v1927_v24  ;;  %v935_v24 = vrot.slane %v844_v35, %v1966_v9 }
 0x18b   : > { %v731_v55 = vmax.f32 %v729_v53, 0.0 }
 0x18c   : > { %v732_v56 = vmax.f32 %v730_v54, 0.0  ;;  %v922_v54 = vrot.slane %v844_v35, %v1940_v39  ;;  %v948_v39 = vrot.slane %v844_v35, %v1947_v46  ;;  %v839_v46 = vld [vmem:[%s2274_s6 + $0x8] sm:$0xff] }
 0x18d   : > { %v851_v35 = vld [vmem:[%s2278_s10 + $0x28] sm:$0xff] }
 0x18e   : > { %v1644_v57 = vpack.i.bf16 %v732_v56, %v731_v55 }
 0x190   : > { %1645 = vrot.lane.b32.xlu0 %v1644_v57, %s2300_s0  ;;  %1640 = vrot.lane.b32.xlu1 %v1644_v57, %s2301_s14 }
 0x194   : > { %1650 = vrot.lane.b32.xlu1 %v1644_v57, %s2302_s16  ;;  %s2292_s16 = smov 63  }
 0x202   : > { %v1646_v58 = vpop.permute.xlu0 %1645  ;;  %v1641_v59 = vpop.permute.xlu1 %1640 }
 0x203   : > { %v1648_v60 = vunpack.i.h.bf16 %v1646_v58  ;;  %v1647_v61 = vunpack.i.l.bf16 %v1646_v58  ;;  %v1643_v62 = vunpack.i.h.bf16 %v1641_v59  ;;  %v1642_v63 = vunpack.i.l.bf16 %v1641_v59 }
 0x205   : > { %v739_v1 = vsel %vm524_vm5, %v1642_v63, %v1643_v62  ;;  %v743_v2 = vsel %vm524_vm5, %v1643_v62, %v1642_v63  ;;  %v750_v8 = vsel %vm564_vm6, %v1647_v61, %v1648_v60  ;;  %v754_v14 = vsel %vm564_vm6, %v1648_v60, %v1647_v61 }
 0x206   : > { %v744_v3 = vmax.f32 %v731_v55, %v739_v1  ;;  %v745_v4 = vmax.f32 %v732_v56, %v743_v2  ;;  %v1651_v5 = vpop.permute.xlu1 %1650  ;;  %vm1264_vm5 = vcmask 392192  }
 0x207   : > { %v1653_v15 = vunpack.i.h.bf16 %v1651_v5  ;;  %v1652_v16 = vunpack.i.l.bf16 %v1651_v5  ;;  %v1388_v5 = vld [vmem:[%s2277_s9 + $0x8] ss:$0 sm:$0xff] }
 0x208   : > { %v755_v17 = vmax.f32 %v744_v3, %v750_v8  ;;  %v756_v19 = vmax.f32 %v745_v4, %v754_v14 }
 0x209   : > { %v761_v20 = vsel %vm584_vm8, %v1652_v16, %v1653_v15  ;;  %v765_v21 = vsel %vm584_vm8, %v1653_v15, %v1652_v16  ;;  %vm1269_vm8 = vcmask 785408  }
 0x20a   : > { %v766_v22 = vmax.f32 %v755_v17, %v761_v20  ;;  %v767_v25 = vmax.f32 %v756_v19, %v765_v21  ;;  %v846_v19 = vld [vmem:[%s2278_s10] sm:$0xff]  ;;  %v847_v20 = vld [vmem:[%s2278_s10 + $0x8] sm:$0xff] }
 0x20b   : > { %v1552_v21 = vpack.c.bf16 %v847_v20, %v846_v19 }
 0x20c   : > { %832 = vmatprep.mubr.f32.mxu1 %v767_v25 }
 0x20d   : > { %833 = vmatmul.mubr.f32.vlgmr.msra.gmra.mrb[2].mxu1 %v766_v22 }
 0x2e0   : > { %v1432_v26 = vpop.f32.mrb[2].mxu1 }
 0x2e1   : > { %v1433_v27 = vpop.f32.mrb[3].mxu1 }
 0x2e2   : > { %v2097_v28 = vadd.f32 %v1433_v27, %v1432_v26 }
 0x2e4   : > { %858 = vrot.lane.b32.xlu1 %v2097_v28, %s1729_s22  ;;  %855 = vrot.lane.b32.xlu0 %v2097_v28, %s1730_s24  ;;  %s1737_s22 = smov 57   ;;  %s1738_s24 = smov 121   ;;  %v910_v13 = vmul.f32 %v2097_v28, %v909_v51 }
 0x2e8   : > { %871 = vrot.lane.b32.xlu1 %v2097_v28, %s1731_s15  ;;  %868 = vrot.lane.b32.xlu0 %v2097_v28, %s1732_s12  ;;  %s2305_s12 = smov 56   ;;  %s377_s15 = sand.u32 1, %s1709_s18  }
 0x2ec   : > { %884 = vrot.lane.b32.xlu1 %v2097_v28, %s1733_s25  ;;  %881 = vrot.lane.b32.xlu0 %v2097_v28, %s1734_s30  ;;  %s2288_s25 = smov 56   ;;  %s2290_s30 = smov 120  }
 0x2f0   : > { %897 = vrot.lane.b32.xlu1 %v2097_v28, %s2303_s29  ;;  %894 = vrot.lane.b32.xlu0 %v2097_v28, %s1735_s13  ;;  %s2294_s29 = smov 55   ;;  %s1742_s13 = smov 119  }
 0x2f4   : > { %914 = vrot.lane.b32.xlu1 %v2097_v28, %s2292_s16  ;;  %911 = vrot.lane.b32.xlu0 %v2097_v28, %s2301_s14  ;;  %s2304_s16 = smov 63  }
 0x2f8   : > { %927 = vrot.lane.b32.xlu1 %v2097_v28, %s1737_s22  ;;  %924 = vrot.lane.b32.xlu0 %v2097_v28, %s1738_s24  ;;  %s2306_s22 = smov 120   ;;  %s2307_s24 = smov 55  }
 0x2fc   : > { %940 = vrot.lane.b32.xlu1 %v2097_v28, %s2288_s25  ;;  %937 = vrot.lane.b32.xlu0 %v2097_v28, %s2290_s30  ;;  %s1745_s25 = smov 64   ;;  %s1746_s30 = smov 80  }
 0x300   : > { %953 = vrot.lane.b32.xlu1 %v2097_v28, %s2294_s29  ;;  %950 = vrot.lane.b32.xlu0 %v2097_v28, %s1742_s13  ;;  %s1747_s29 = smov 96  }
 0x304   : > { %1052 = vperm.xlu1 %1638, %v841_v30   ;;  %1047 = vperm.xlu0 %1637, %v840_v31   ;;  %v849_v30 = vld [vmem:[%s2278_s10 + $0x18] sm:$0xff] }
 0x308   : > { %1064 = vperm.xlu1 %1638, %v843_v32   ;;  %1059 = vperm.xlu0 %1637, %v842_v33   ;;  %v1556_v32 = vpack.c.bf16 %v849_v30, %v848_v29 }
 0x356   : > { %v859_v0 = vpop.permute.xlu1 %858  ;;  %v856_v34 = vpop.permute.xlu0 %855 }
 0x357   : > { %v862_v38 = vsel %vm861_vm11, %v856_v34, %v859_v0  ;;  %v850_v34 = vld [vmem:[%s2278_s10 + $0x20] sm:$0xff] }
 0x358   : > { %v867_v41 = vmul.f32 %v866_v36, %v862_v38  ;;  %v1560_v36 = vpack.c.bf16 %v851_v35, %v850_v34 }
 0x35a   : > { %v872_v11 = vpop.permute.xlu1 %871  ;;  %v869_v40 = vpop.permute.xlu0 %868 }
 0x35b   : > { %v875_v12 = vsel %vm874_vm12, %v869_v40, %v872_v11  ;;  %v852_v11 = vld [vmem:[%s2278_s10 + $0x30] sm:$0xff]  ;;  %v853_v40 = vld [vmem:[%s2278_s10 + $0x38] sm:$0xff] }
 0x35c   : > { %v880_v42 = vmul.f32 %v879_v37, %v875_v12  ;;  %v1564_v12 = vpack.c.bf16 %v853_v40, %v852_v11 }
 0x35e   : > { %v885_v43 = vpop.permute.xlu1 %884  ;;  %v882_v44 = vpop.permute.xlu0 %881  ;;  %v1536_v45 = vpack.c.bf16 %v880_v42, %v867_v41 }
 0x35f   : > { %v888_v49 = vsel %vm887_vm13, %v882_v44, %v885_v43 }
 0x360   : > { %1537 = vmatprep.subr.bf16.mxu0 %v1536_v45  ;;  %v893_v52 = vmul.f32 %v892_v47, %v888_v49 }
 0x361   : > { %1539 = vmatpush3.bf16.msra.mxu0 %v1536_v45 }
 0x362   : > { %v898_v18 = vpop.permute.xlu1 %897  ;;  %v895_v50 = vpop.permute.xlu0 %894 }
 0x363   : > { %v900_v10 = vsel %vm492_vm1, %v895_v50, %v898_v18  ;;  %vm943_vm1 = vcmask 457728  }
 0x364   : > { %v905_v53 = vmul.f32 %v904_v48, %v900_v10 }
 0x366   : > { %v915_v55 = vpop.permute.xlu1 %914  ;;  %v912_v56 = vpop.permute.xlu0 %911  ;;  %v1540_v57 = vpack.c.bf16 %v905_v53, %v893_v52 }
 0x367   : > { %v918_v23 = vsel %vm917_vm14, %v912_v56, %v915_v55 }
 0x368   : > { %v923_v58 = vmul.f32 %v922_v54, %v918_v23  ;;  %1541 = vmatprep.subr.bf16.mxu0 %v1540_v57 }
 0x369   : > { %1543 = vmatpush3.bf16.msra.mxu0 %v1540_v57 }
 0x36a   : > { %v928_v59 = vpop.permute.xlu1 %927  ;;  %v925_v60 = vpop.permute.xlu0 %924  ;;  %v1544_v61 = vpack.c.bf16 %v923_v58, %v910_v13 }
 0x36b   : > { %v931_v62 = vsel %vm930_vm15, %v925_v60, %v928_v59 }
 0x36c   : > { %1545 = vmatprep.subr.bf16.mxu0 %v1544_v61  ;;  %v936_v3 = vmul.f32 %v935_v24, %v931_v62 }
 0x36d   : > { %1547 = vmatpush3.bf16.msra.mxu0 %v1544_v61 }
 0x36e   : > { %v941_v63 = vpop.permute.xlu1 %940  ;;  %v938_v1 = vpop.permute.xlu0 %937 }
 0x36f   : > { %v944_v2 = vsel %vm943_vm1, %v938_v1, %v941_v63 }
 0x370   : > { %v949_v4 = vmul.f32 %v948_v39, %v944_v2 }
 0x372   : > { %v954_v8 = vpop.permute.xlu1 %953  ;;  %v951_v14 = vpop.permute.xlu0 %950  ;;  %v1548_v9 = vpack.c.bf16 %v949_v4, %v936_v3 }
 0x373   : > { %v957_v15 = vsel %vm956_vm2, %v951_v14, %v954_v8 }
 0x374   : > { %v962_v16 = vmul.f32 %v1388_v5, %v957_v15  ;;  %1549 = vmatprep.subr.bf16.mxu0 %v1548_v9 }
 0x375   : > { %1551 = vmatpush3.bf16.msra.mxu0 %v1548_v9 }
 0x376   : > { %1472 = vmatprep.subr.mxu0 %v962_v16 }
 0x379   : > { %1473 = vmatpush3.msra.mxu0 %v962_v16 }
 0x37a   : > { %1475 = vmatmul.mubr.msk.f32.vlgmr.msra.gmra.mrb[0].mxu0 %vm963_vm10, %v839_v46  ;;  %1553 = vmatprep.subr.bf16.mxu0 %v1552_v21 }
 0x37b   : > { %1555 = vmatpush3.bf16.msra.mxu0 %v1552_v21 }
 0x37c   : > { %1557 = vmatprep.subr.bf16.mxu0 %v1556_v32 }
 0x37f   : > { %1559 = vmatpush3.bf16.msra.mxu0 %v1556_v32  ;;  %v1748_v32 = vmov 1966171168  }
 0x380   : > { %1561 = vmatprep.subr.bf16.mxu0 %v1560_v36 }
 0x383   : > { %v1053_v17 = vpop.permute.xlu1 %1052  ;;  %v1048_v27 = vpop.permute.xlu0 %1047  ;;  %1563 = vmatpush3.bf16.msra.mxu0 %v1560_v36 }
 0x384   : > { %1565 = vmatprep.subr.bf16.mxu0 %v1564_v12 }
 0x387   : > { %v1065_v28 = vpop.permute.xlu1 %1064  ;;  %v1060_v37 = vpop.permute.xlu0 %1059  ;;  %1567 = vmatpush3.bf16.msra.mxu0 %v1564_v12 }
 0x44d   : > { %v1476_v22 = vpop.f32.mrb[0].mxu0 }
 0x44e   : > { %v1056_v25 = vmul.f32 %v1476_v22, %v1053_v17  ;;  %v1036_v26 = vpop.f32.mrb[1].mxu0 }
 0x44f   : > { %v1055_v0 = vmul.f32 %v1048_v27, %v1036_v26 }
 0x450   : > { %v1068_v31 = vadd.f32 %v1065_v28, %v1056_v25 }
 0x451   : > { %v1067_v38 = vadd.f32 %v1060_v37, %v1055_v0 }
 0x452   : > { %v1070_v33 = vmax.f32 %v1068_v31, 0.0 }
 0x453   : > { %v1069_v41 = vmax.f32 %v1067_v38, 0.0 }
 0x454   : > { %1081 = vrot.lane.b32.xlu1 %v1070_v33, %s2304_s16  ;;  %1075 = vrot.lane.b32.xlu0 %v1070_v33, %s2301_s14 }
 0x458   : > { %1097 = vrot.lane.b32.xlu1 %v1070_v33, %s2305_s12  ;;  %1091 = vrot.lane.b32.xlu0 %v1070_v33, %s2306_s22 }
 0x45c   : > { %1079 = vrot.lane.b32.xlu1 %v1069_v41, %s2304_s16  ;;  %1073 = vrot.lane.b32.xlu0 %v1069_v41, %s2301_s14  ;;  %s2308_s14 = smov 16   ;;  %s1744_s16 = smov 48  }
 0x460   : > { %1095 = vrot.lane.b32.xlu1 %v1069_v41, %s2305_s12  ;;  %1089 = vrot.lane.b32.xlu0 %v1069_v41, %s2306_s22  ;;  %s1399_s12 = sshll.u32 %s1831_s21, 5 }
 0x464   : > { %1111 = vrot.lane.b32.xlu1 %v1069_v41, %s2307_s24  ;;  %1105 = vrot.lane.b32.xlu0 %v1069_v41, %s1742_s13 }
 0x468   : > { %1113 = vrot.lane.b32.xlu1 %v1070_v33, %s2307_s24  ;;  %1107 = vrot.lane.b32.xlu0 %v1070_v33, %s1742_s13  ;;  %s1743_s13 = smov 32  }
 0x4c6   : > { %v1082_v42 = vpop.permute.xlu1 %1081  ;;  %v1076_v43 = vpop.permute.xlu0 %1075 }
 0x4c7   : > { %v1086_v52 = vsel %vm917_vm14, %v1076_v43, %v1082_v42 }
 0x4c8   : > { %v1088_v23 = vmax.f32 %v1070_v33, %v1086_v52  ;;  %v1283_v33 = vunpack.c.l.s4 %v1748_v32 }
 0x4ca   : > { %v1098_v44 = vpop.permute.xlu1 %1097  ;;  %v1092_v45 = vpop.permute.xlu0 %1091  ;;  %v1284_v40 = vunpack.c.0.s8 %v1283_v33 }
 0x4cb   : > { %v1102_v56 = vsel %vm943_vm1, %v1092_v45, %v1098_v44 }
 0x4cc   : > { %v1104_v13 = vmax.f32 %v1088_v23, %v1102_v56 }
 0x4ce   : > { %v1080_v47 = vpop.permute.xlu1 %1079  ;;  %v1074_v48 = vpop.permute.xlu0 %1073 }
 0x4cf   : > { %v1085_v49 = vsel %vm917_vm14, %v1074_v48, %v1080_v47 }
 0x4d0   : > { %v1087_v51 = vmax.f32 %v1069_v41, %v1085_v49 }
 0x4d2   : > { %v1096_v18 = vpop.permute.xlu1 %1095  ;;  %v1090_v50 = vpop.permute.xlu0 %1089 }
 0x4d3   : > { %v1101_v10 = vsel %vm943_vm1, %v1090_v50, %v1096_v18  ;;  %v1287_v18 = vsub.s32 %v1284_v40, %v1892_v7 }
 0x4d4   : > { %v1103_v53 = vmax.f32 %v1087_v51, %v1101_v10 }
 0x4d6   : > { %v1112_v54 = vpop.permute.xlu1 %1111  ;;  %v1106_v55 = vpop.permute.xlu0 %1105 }
 0x4d7   : > { %v1117_v57 = vsel %vm956_vm2, %v1106_v55, %v1112_v54 }
 0x4d8   : > { %v1119_v58 = vmax.f32 %v1103_v53, %v1117_v57 }
 0x4da   : > { %v1114_v59 = vpop.permute.xlu1 %1113  ;;  %1493 = vmatprep.mubr.msk.f32.mxu0 %vm1121_vm3, %v1119_v58  ;;  %v1108_v60 = vpop.permute.xlu0 %1107 }
 0x4db   : > { %v1118_v61 = vsel %vm956_vm2, %v1108_v60, %v1114_v59 }
 0x4dc   : > { %v1120_v24 = vmax.f32 %v1104_v13, %v1118_v61 }
 0x4de   : > { %1494 = vmatmul.mubr.msk.f32.vlgmr.msra.gmra.mrb[2].mxu0 %vm1121_vm3, %v1120_v24 }
 0x5b1   : > { %v1495_v39 = vpop.f32.mrb[2].mxu0 }
 0x5b2   : > { %v1194_v62 = vpop.f32.mrb[3].mxu0  ;;  %v1233_v63 = vrot.slane %v1495_v39, 1  ;;  %v1237_v2 = vrot.slane %v1495_v39, 2  ;;  %v1241_v4 = vrot.slane %v1495_v39, 3  ;;  %v1245_v8 = vrot.slane %v1495_v39, 4 }
 0x5b3   : > { %v1204_v1 = vrot.slane %v1194_v62, 1  ;;  %v1208_v3 = vrot.slane %v1194_v62, 2  ;;  %v1212_v5 = vrot.slane %v1194_v62, 3  ;;  %v1216_v14 = vrot.slane %v1194_v62, 4 }
 0x5b4   : > { %1234 = vrot.lane.b32.xlu1 %v1233_v63, %s2308_s14  ;;  %v1249_v9 = vrot.slane %v1495_v39, 5  ;;  %v1220_v15 = vrot.slane %v1194_v62, 5  ;;  %v1253_v16 = vrot.slane %v1495_v39, 6  ;;  %v1224_v46 = vrot.slane %v1194_v62, 6 }
 0x5b5   : > { %1205 = vrot.lane.b32.xlu0 %v1204_v1, %s2308_s14  ;;  %v1257_v17 = vrot.slane %v1495_v39, 7  ;;  %v1228_v19 = vrot.slane %v1194_v62, 7 }
 0x5b8   : > { %1238 = vrot.lane.b32.xlu1 %v1237_v2, %s1743_s13 }
 0x5b9   : > { %1209 = vrot.lane.b32.xlu0 %v1208_v3, %s1743_s13 }
 0x5bc   : > { %1242 = vrot.lane.b32.xlu1 %v1241_v4, %s1744_s16 }
 0x5bd   : > { %1213 = vrot.lane.b32.xlu0 %v1212_v5, %s1744_s16  ;;  %s2224_s16 = scalar_lea.hbm %s2279_s11, %s1399_s12 }
 0x5c0   : > { %1246 = vrot.lane.b32.xlu1 %v1245_v8, %s1745_s25 }
 0x5c1   : > { %1217 = vrot.lane.b32.xlu0 %v1216_v14, %s1745_s25  ;;  %s1303_s25 = scalar_lea.sflag [#allocation3], %s377_s15 }
 0x5c4   : > { %1250 = vrot.lane.b32.xlu1 %v1249_v9, %s1746_s30 }
 0x5c5   : > { %1221 = vrot.lane.b32.xlu0 %v1220_v15, %s1746_s30  ;;  %s1749_s30 = smov [#allocation2]  }
 0x5c8   : > { %1254 = vrot.lane.b32.xlu1 %v1253_v16, %s1747_s29 }
 0x5c9   : > { %1225 = vrot.lane.b32.xlu0 %v1224_v46, %s1747_s29  ;;  %s1659_s29 = sshll.u32 %s1749_s30, 4  ;;  %s1660_s29 = int_to_ptr.vmem [resolvable:$false] %s1659_s29 }
 0x5cc   : > { %1258 = vrot.lane.b32.xlu1 %v1257_v17, %s2300_s0 }
 0x5cd   : > { %1229 = vrot.lane.b32.xlu0 %v1228_v19, %s2300_s0  ;;  %s1380_s0 = sshll.u32 %s377_s15, 1 }
 0x5ce   : > { %s379_s22 = scalar_lea.vmem [#allocation2], %s1380_s0  ;;  %s1661_s0 = scalar_lea.vmem %s1660_s29, 64 }
 0x5cf   : > { %s1317_s24 = sshll.u32 %s379_s22, 4  ;;  %s2226_s24 = int_to_ptr.vmem [resolvable:$true] %s1317_s24 }
 0x5d0   : > { %s1655_s21 = scalar_lea.vmem %s2226_s24, 32  ;;  %p1662_p0 = scmp.lt.s32.totalorder %s2226_s24, %s1660_s29 }
 0x5d1   : > { %p1656_p11 = scmp.ne.s32.totalorder %s2226_s24, %s1655_s21  ;;  %p1663_p1 = scmp.lt.s32.totalorder %s1661_s0, %s1655_s21 }
 0x5d3   : > { %p1657_p12 = pnand %p1656_p11, %p1848_p5  ;;  %p1664_p2 = por %p1663_p1, %p1662_p0 }
 0x5d5   : > { %p1658_p13 = pneg %p1657_p12 }
 0x5d7   : > { %p1665_p3 = pnand %p1664_p2, %p1658_p13 }
 0x626   : > { %v1235_v20 = vpop.permute.xlu1 %1234 }
 0x627   : > { %v1206_v21 = vpop.permute.xlu0 %1205  ;;  %v1272_v0 = vsel %vm452_vm0, %v1495_v39, %v1235_v20 }
 0x628   : > { %v1261_v34 = vsel %vm452_vm0, %v1194_v62, %v1206_v21  ;;  %vm1299_vm0 = vcmp.lt.s32.totalorder %v437_v6, 256 }
 0x62a   : > { %v1239_v22 = vpop.permute.xlu1 %1238 }
 0x62b   : > { %v1210_v25 = vpop.permute.xlu0 %1209  ;;  %v1273_v35 = vsel %vm1262_vm4, %v1272_v0, %v1239_v22 }
 0x62c   : > { %v1263_v37 = vsel %vm1262_vm4, %v1261_v34, %v1210_v25 }
 0x62e   : > { %v1243_v26 = vpop.permute.xlu1 %1242 }
 0x62f   : > { %v1214_v27 = vpop.permute.xlu0 %1213  ;;  %v1274_v38 = vsel %vm1264_vm5, %v1273_v35, %v1243_v26 }
 0x630   : > { %v1265_v12 = vsel %vm1264_vm5, %v1263_v37, %v1214_v27 }
 0x632   : > { %v1247_v28 = vpop.permute.xlu1 %1246 }
 0x633   : > { %v1218_v29 = vpop.permute.xlu0 %1217  ;;  %v1275_v41 = vsel %vm1121_vm3, %v1274_v38, %v1247_v28 }
 0x634   : > { %v1266_v42 = vsel %vm1121_vm3, %v1265_v12, %v1218_v29 }
 0x636   : > { %v1251_v30 = vpop.permute.xlu1 %1250 }
 0x637   : > { %v1222_v31 = vpop.permute.xlu0 %1221  ;;  %v1276_v43 = vsel %vm1267_vm7, %v1275_v41, %v1251_v30 }
 0x638   : > { %v1268_v44 = vsel %vm1267_vm7, %v1266_v42, %v1222_v31 }
 0x63a   : > { %v1255_v36 = vpop.permute.xlu1 %1254 }
 0x63b   : > { %v1226_v11 = vpop.permute.xlu0 %1225  ;;  %v1277_v45 = vsel %vm1269_vm8, %v1276_v43, %v1255_v36 }
 0x63c   : > { %v1270_v48 = vsel %vm1269_vm8, %v1268_v44, %v1226_v11 }
 0x63e   : > { %v1259_v47 = vpop.permute.xlu1 %1258 }
 0x63f   : > { %v1278_v49 = vsel %vm564_vm6, %v1277_v45, %v1259_v47  ;;  %v1230_v50 = vpop.permute.xlu0 %1229 }
 0x640   : > { %v1271_v10 = vsel %vm564_vm6, %v1270_v48, %v1230_v50 }
 0x641   : > { %v1281_v51 = vcombine.low %v1271_v10, %v1278_v49 }
 0x643   : > { %v1288_v52 = vrot.slane %v1281_v51, %v1287_v18 }
 0x645   : > { %v1295_v53 = vrot.slane %v1288_v52, %v1287_v18 }
 0x647   : > { %1301 = vst.msk [vmem:[%s379_s22] sm:$0x3] %vm1299_vm0, %v1295_v53 }
 0x648   : > { %1668 = shalt.err (!%p1665_p3)
}
 0x649   : > { %s1669_s15 = scalar_lea.hbm %s2224_s16, 32  ;;  %s1673_s14 = scalar_lea.hbm %s2279_s11, 64 }
 0x64a   : > { %p1670_p4 = scmp.ne.s32.totalorder %s2224_s16, %s1669_s15  ;;  %p1674_p9 = scmp.lt.u32.totalorder %s2224_s16, %s2279_s11 }
 0x64b   : > { %p1675_p10 = scmp.lt.u32.totalorder %s1673_s14, %s1669_s15  ;;  %p1677_p12 = scmp.lt.u32.totalorder %s1669_s15, %s2224_s16 }
 0x64c   : > { %p1671_p7 = pnand %p1670_p4, %p1848_p5 }
 0x64d   : > { %p1676_p11 = por %p1675_p10, %p1674_p9 }
 0x64e   : > { %p1672_p8 = pneg %p1671_p7 }
 0x64f   : > { %p1678_p13 = por %p1677_p12, %p1676_p11 }
 0x651   : > { %p1679_p0 = pnand %p1678_p13, %p1672_p8 }
 0x653   : > { %1682 = shalt.err (!%p1679_p0)
}
 0x654   : > { %1568 = dma.vmem_to_hbm [thread:$0]  (%p1848_p5), %s2226_s24, 32, %s2224_s16, %s1303_s25  }
 0x655 PF: > { %p1574_p1 = scmp.ge.s32.totalorder %s1717_s20, 2  ;;  %s1329_s21 = sand.u32 1, %s1705_s17  }
 0x656   : > { %s1330_s29 = scalar_lea.sflag [#allocation3], %s1329_s21 }
 0x657   : > { %p1571_p2 = pnand %p1574_p1, %p1852_p6 }
 0x659   : > { %1700 = dma.done.wait (!%p1571_p2), %s1330_s29, 32  }
 0x65a   : > { %1702 = vsyncadd (!%p1571_p2), %s1330_s29, 4294967264  ;;  %p21_p3 = scmp.ge.s32.totalorder %s1835_s23, 4   ;;  %s2309_s17 = smov %s1709_s18 }
 0x65b   : > { %s2310_s18 = smov %s1713_s19  ;;  %s2311_s19 = smov %s1846_s26 }
 0x65c   : > { %s2312_s20 = smov %s1835_s23  ;;  %23 = sbr.rel (!%p21_p3) target bundleno = 5 (0x5), region = 99 }
 0x663   :  { %1335 = vsyncpa [#allocation3], 1 }
 0x664   :  { %1337 = vsyncpa [#allocation3 + $0x1], 1 }

</bundles_post_ra>
